<compile_context>
chip_gen: v6e
topology: v6e:2x2x1
jax: 0.10.0
libtpu: 0.0.40
codegen_flags: <defaults>
</compile_context>

<pallas_src>
import functools
import math

import jax
import jax.numpy as jnp
import numpy as np
from jax import lax
from jax.experimental import pallas as pl
from jax.experimental.pallas import tpu as pltpu


def _attention_kernel(x_ref, wqkv_ref, bqkv_ref, wl_ref, bl_ref, mask_ref,
                      o_ref, *, cb, n_chunks, a, h, d_k, out_dim):
    # x_ref: (tb*A, input_dim) rows covering tb batch elements of A agents.
    c_rows = cb * a                       # rows per dense-attention chunk

    wqkv = wqkv_ref[...]                  # (Din, 3*Dout) bf16
    wl = wl_ref[...]                      # (Dout, Dout)  bf16
    mask = mask_ref[...]                  # (C, C) f32 block-diag additive mask
    # Hoist bias broadcasts out of the chunk loop (JAX does not CSE them).
    bqkv_b = jnp.broadcast_to(bqkv_ref[...], (c_rows, 3 * out_dim))
    bl_b = jnp.broadcast_to(bl_ref[...], (c_rows, out_dim))

    align = c_rows & -c_rows              # largest power-of-two divisor of C

    def chunk_body(c, carry):
        row0 = pl.multiple_of(c * c_rows, align)
        rows = pl.ds(row0, c_rows)

        x = x_ref[rows, :]                # (C, Din) bf16
        # Fused Q|K|V projection (1/sqrt(d_k) already folded into Q columns).
        qkv = jnp.dot(x, wqkv, preferred_element_type=jnp.float32) + bqkv_b

        # Accumulate the heads straight into the output projection:
        #   out = bl + sum_h ctx_h @ Wl[h*d_k:(h+1)*d_k, :]
        out = bl_b
        for hd in range(h):               # static python loop, h is tiny
            lo = hd * d_k
            qh = qkv[:, lo:lo + d_k]
            kh = qkv[:, out_dim + lo:out_dim + lo + d_k]
            vh = qkv[:, 2 * out_dim + lo:2 * out_dim + lo + d_k]

            # Dense (C, C) scores; k^T folded into the contraction dims.
            s = lax.dot_general(qh, kh, (((1,), (1,)), ((), ())),
                                preferred_element_type=jnp.float32)
            s = s + mask                  # -1e9 across different batch elems
            m = jnp.max(s, axis=-1, keepdims=True)
            e = jnp.exp(s - m)
            denom = jnp.sum(e, axis=-1, keepdims=True)
            p = e * pl.reciprocal(denom, approx=True)       # EUP slot

            ctx = jnp.dot(p, vh, preferred_element_type=jnp.float32)  # (C,d_k)
            out = out + jnp.dot(ctx.astype(wl.dtype), wl[lo:lo + d_k, :],
                                preferred_element_type=jnp.float32)

        o_ref[rows, :] = out.astype(o_ref.dtype)
        return carry

    lax.fori_loop(0, n_chunks, chunk_body, 0, unroll=True)


def attention_module_forward(view, feature, params, *, h,
                             compute_dtype=jnp.bfloat16,
                             out_dtype=jnp.bfloat16,
                             tb=None):
    """view: (B, A, *view_dim), feature: (B, A, *feature_dim) -> (B, A, output_dim)."""
    B, A = view.shape[0], view.shape[1]
    # Concatenate + cast straight to the compute dtype (no f32 staging copy).
    x = jnp.concatenate(
        [view.reshape(B, A, -1), feature.reshape(B, A, -1)],
        axis=-1).astype(compute_dtype)                      # (B, A, Din)

    input_dim = x.shape[-1]
    output_dim = params["wq"].shape[-1]
    d_k = output_dim // h
    inv_sqrt_dk = 1.0 / math.sqrt(d_k)

    # Pack Q|K|V weights/biases; fold the attention scale into the Q part
    # (f32 math, then cast to the MXU compute dtype).
    wqkv = jnp.concatenate(
        [params["wq"] * inv_sqrt_dk, params["wk"], params["wv"]],
        axis=-1).astype(compute_dtype)                      # (Din, 3*Dout)
    bqkv = jnp.concatenate(
        [params["bq"] * inv_sqrt_dk, params["bk"], params["bv"]],
        axis=-1).astype(jnp.float32)                        # (1, 3*Dout)
    wl = params["wl"].astype(compute_dtype)                 # (Dout, Dout)
    bl = params["bl"].astype(jnp.float32)                   # (1, Dout)

    # ---- tiling ------------------------------------------------------------
    # 16-bit blocked arrays need a sublane (row) granularity of 16.
    row_align = 16 if (jnp.dtype(compute_dtype).itemsize < 4
                       or jnp.dtype(out_dtype).itemsize < 4) else 8

    # Dense-attention chunk: ~128 rows = cb batch elements of A agents each.
    cb = max(1, 128 // A)
    cb = min(cb, max(1, pl.cdiv(B, 2)))          # keep small batches splittable
    g = math.gcd(cb * A, row_align)
    if g != row_align:
        cb *= row_align // g                     # chunk rows multiple of 16

    # Batch tile: target ~1024 rows per grid step (review: 512-2048), but keep
    # >= 2 grid steps whenever B permits so both v7x TensorCores are used.
    target_rows = 1024
    chunks_per_step = max(1, target_rows // (cb * A))
    n_chunks_total = pl.cdiv(B, cb)
    chunks_per_step = min(chunks_per_step, max(1, pl.cdiv(n_chunks_total, 2)))
    if tb is None:
        tb = cb * chunks_per_step
    else:
        tb = max(cb, (tb // cb) * cb)            # honour caller, chunk-aligned
    g = math.gcd(tb * A, row_align)
    if g != row_align:
        tb *= row_align // g                     # row-block multiple of 16

    n_chunks = tb // cb
    c_rows = cb * A
    B_pad = pl.cdiv(B, tb) * tb
    n_rows = B_pad * A
    grid = (B_pad // tb,)

    # Block-diagonal additive mask over one chunk (same for every chunk since
    # chunks are aligned to cb-batch boundaries); built at trace time.
    batch_id = np.repeat(np.arange(cb), A)                  # (C,)
    mask_np = np.where(batch_id[:, None] == batch_id[None, :], 0.0, -1e9)
    mask = jnp.asarray(mask_np, dtype=jnp.float32)          # (C, C)

    x2 = x.reshape(B * A, input_dim)
    if B_pad != B:
        x2 = jnp.pad(x2, ((0, (B_pad - B) * A), (0, 0)))    # padded rows dropped later

    kernel = functools.partial(_attention_kernel, cb=cb, n_chunks=n_chunks,
                               a=A, h=h, d_k=d_k, out_dim=output_dim)

    total_chunks = B_pad // cb
    flops = int(2 * n_rows * input_dim * 3 * output_dim          # fused QKV proj
                + 4 * h * total_chunks * c_rows * c_rows * d_k   # scores + p@v
                + 2 * n_rows * output_dim * output_dim)          # output proj
    bytes_accessed = int(x2.size * x2.dtype.itemsize
                         + wqkv.size * wqkv.dtype.itemsize
                         + bqkv.size * 4
                         + wl.size * wl.dtype.itemsize
                         + bl.size * 4
                         + mask.size * 4
                         + n_rows * output_dim * jnp.dtype(out_dtype).itemsize)
    cost = pl.CostEstimate(flops=flops,
                           transcendentals=int(h * total_chunks * c_rows * c_rows),
                           bytes_accessed=bytes_accessed)

    out = pl.pallas_call(
        kernel,
        out_shape=jax.ShapeDtypeStruct((n_rows, output_dim), out_dtype),
        grid_spec=pltpu.PrefetchScalarGridSpec(
            num_scalar_prefetch=0,
            grid=grid,
            in_specs=[
                pl.BlockSpec((tb * A, input_dim), lambda b: (b, 0)),          # x rows
                pl.BlockSpec((input_dim, 3 * output_dim), lambda b: (0, 0)),  # Wqkv
                pl.BlockSpec((1, 3 * output_dim), lambda b: (0, 0)),          # bqkv
                pl.BlockSpec((output_dim, output_dim), lambda b: (0, 0)),     # Wl
                pl.BlockSpec((1, output_dim), lambda b: (0, 0)),              # bl
                pl.BlockSpec((c_rows, c_rows), lambda b: (0, 0)),             # mask
            ],
            out_specs=pl.BlockSpec((tb * A, output_dim), lambda b: (b, 0)),
        ),
        compiler_params=pltpu.CompilerParams(dimension_semantics=("parallel",)),
        cost_estimate=cost,
    )(x2, wqkv, bqkv, wl, bl, mask)

    return out[: B * A].reshape(B, A, output_dim)


def _reference_forward(view, feature, params, *, h):
    """Pure-JAX f32 reference reproducing the PyTorch module semantics."""
    B, A = view.shape[0], view.shape[1]
    x = jnp.concatenate([view.reshape(B, A, -1), feature.reshape(B, A, -1)], axis=-1)
    output_dim = params["wq"].shape[-1]
    d_k = output_dim // h

    def proj(w, b):
        y = x @ w + b[0]
        return y.reshape(B, A, h, d_k).transpose(0, 2, 1, 3)    # (B, h, A, d_k)

    q = proj(params["wq"], params["bq"])
    k = proj(params["wk"], params["bk"])
    v = proj(params["wv"], params["bv"])

    scores = jnp.einsum("bhad,bhed->bhae", q, k) / math.sqrt(d_k)
    p = jax.nn.softmax(scores, axis=-1)
    new_v = jnp.einsum("bhae,bhed->bhad", p, v)                 # (B, h, A, d_k)
    new_v = new_v.transpose(0, 2, 1, 3).reshape(B, A, h * d_k)
    return new_v @ params["wl"] + params["bl"][0]


def init_params(key, input_dim, output_dim):
    ks = jax.random.split(key, 8)
    scale_in = 1.0 / math.sqrt(input_dim)
    scale_out = 1.0 / math.sqrt(output_dim)
    return {
        "wq": jax.random.uniform(ks[0], (input_dim, output_dim), jnp.float32, -scale_in, scale_in),
        "bq": jax.random.uniform(ks[1], (1, output_dim), jnp.float32, -scale_in, scale_in),
        "wk": jax.random.uniform(ks[2], (input_dim, output_dim), jnp.float32, -scale_in, scale_in),
        "bk": jax.random.uniform(ks[3], (1, output_dim), jnp.float32, -scale_in, scale_in),
        "wv": jax.random.uniform(ks[4], (input_dim, output_dim), jnp.float32, -scale_in, scale_in),
        "bv": jax.random.uniform(ks[5], (1, output_dim), jnp.float32, -scale_in, scale_in),
        "wl": jax.random.uniform(ks[6], (output_dim, output_dim), jnp.float32, -scale_out, scale_out),
        "bl": jax.random.uniform(ks[7], (1, output_dim), jnp.float32, -scale_out, scale_out),
    }


if __name__ == "__main__":
    # Shapes consistent with the module:
    #   view_dim=(4,4)->16, feature_dim=(16,)->16, input_dim=32,
    #   output_dim=32, nagent=8.
    view_dim = (4, 4)
    feature_dim = (16,)
    input_dim = int(np.prod(view_dim)) + int(np.prod(feature_dim))   # 32
    output_dim = 32
    A = 8

    key = jax.random.PRNGKey(0)
    k_params, k_data = jax.random.split(key)
    params = init_params(k_params, input_dim, output_dim)

    # (B, h) cases:
    #   (2, 1)  tiny batch (single head, single grid step)
    #   (33, 1) exercises the ~1024-row batch tiling, the in-kernel dense-chunk
    #           fori_loop, a >=2-step parallel grid, and zero-padded tail rows
    #   (5, 2)  exercises the multi-head (static lane slice) path
    for B, h in ((2, 1), (33, 1), (5, 2)):
        k_view, k_feat = jax.random.split(jax.random.fold_in(k_data, 17 * B + h))
        view = jax.random.normal(k_view, (B, A) + view_dim, jnp.float32)
        feature = jax.random.normal(k_feat, (B, A) + feature_dim, jnp.float32)

        out = attention_module_forward(view, feature, params, h=h)
        out = jax.block_until_ready(out)

        ref = _reference_forward(view, feature, params, h=h)
        # bf16 MXU operands, bf16 output store and approx reciprocal in-kernel
        # -> relaxed tolerance against the pure-f32 reference.
        np.testing.assert_allclose(np.asarray(out).astype(np.float32),
                                   np.asarray(ref), rtol=5e-2, atol=5e-2)

    print("KERNEL_OK")
</pallas_src>

<mosaic_0001>
module attributes {stable_mosaic.version = 11 : i64} {
  func.func @_attention_kernel(%arg0: i32, %arg1: memref<16x32xbf16, #tpu.memory_space<vmem>>, %arg2: memref<32x96xbf16, #tpu.memory_space<vmem>>, %arg3: memref<1x96xf32, #tpu.memory_space<vmem>>, %arg4: memref<32x32xbf16, #tpu.memory_space<vmem>>, %arg5: memref<1x32xf32, #tpu.memory_space<vmem>>, %arg6: memref<16x16xf32, #tpu.memory_space<vmem>>, %arg7: memref<16x32xbf16, #tpu.memory_space<vmem>>) attributes {dimension_semantics = [#tpu.dimension_semantics<parallel>], iteration_bounds = array<i64: 1>, scalar_prefetch = 0 : i64, scratch_operands = 0 : i64, tpu.core_type = #tpu.core_type<tc>, window_params = [{transform_indices = @transform_0, window_bounds = array<i64: 16, 32>}, {pipeline_mode = #tpu.pipeline_mode<synchronous>, transform_indices = @transform_1, window_bounds = array<i64: 32, 96>}, {pipeline_mode = #tpu.pipeline_mode<synchronous>, transform_indices = @transform_2, window_bounds = array<i64: 1, 96>}, {pipeline_mode = #tpu.pipeline_mode<synchronous>, transform_indices = @transform_3, window_bounds = array<i64: 32, 32>}, {pipeline_mode = #tpu.pipeline_mode<synchronous>, transform_indices = @transform_4, window_bounds = array<i64: 1, 32>}, {pipeline_mode = #tpu.pipeline_mode<synchronous>, transform_indices = @transform_5, window_bounds = array<i64: 16, 16>}, {transform_indices = @transform_6, window_bounds = array<i64: 16, 32>}]} {
    %c0 = arith.constant 0 : index
    %c0_0 = arith.constant 0 : index
    %0 = vector.load %arg2[%c0, %c0_0] : memref<32x96xbf16, #tpu.memory_space<vmem>>, vector<32x96xbf16>
    %c0_1 = arith.constant 0 : index
    %c0_2 = arith.constant 0 : index
    %1 = vector.load %arg4[%c0_1, %c0_2] : memref<32x32xbf16, #tpu.memory_space<vmem>>, vector<32x32xbf16>
    %c0_3 = arith.constant 0 : index
    %c0_4 = arith.constant 0 : index
    %2 = vector.load %arg6[%c0_3, %c0_4] : memref<16x16xf32, #tpu.memory_space<vmem>>, vector<16x16xf32>
    %c0_5 = arith.constant 0 : index
    %c0_6 = arith.constant 0 : index
    %3 = vector.load %arg3[%c0_5, %c0_6] : memref<1x96xf32, #tpu.memory_space<vmem>>, vector<1x96xf32>
    %4 = vector.shape_cast %3 : vector<1x96xf32> to vector<1x96xf32>
    %5 = vector.broadcast %4 : vector<1x96xf32> to vector<16x96xf32>
    %c0_7 = arith.constant 0 : index
    %c0_8 = arith.constant 0 : index
    %6 = vector.load %arg5[%c0_7, %c0_8] : memref<1x32xf32, #tpu.memory_space<vmem>>, vector<1x32xf32>
    %7 = vector.shape_cast %6 : vector<1x32xf32> to vector<1x32xf32>
    %8 = vector.broadcast %7 : vector<1x32xf32> to vector<16x32xf32>
    %c0_i32 = arith.constant 0 : i32
    %c16_i32 = arith.constant 16 : i32
    %9 = arith.muli %c0_i32, %c16_i32 : i32
    %10 = tpu.assume_multiple %9, 16 : i32
    %11 = arith.index_cast %10 : i32 to index
    %c0_9 = arith.constant 0 : index
    %12 = vector.load %arg1[%11, %c0_9] : memref<16x32xbf16, #tpu.memory_space<vmem>>, vector<16x32xbf16>
    %cst = arith.constant dense<0.000000e+00> : vector<16x96xf32>
    %13 = tpu.matmul %12, %0, %cst {dimension_numbers = #tpu.dot_dimension_numbers<[1], [0], [0], [1], [0, 0, 1, 1], [], []>} : vector<16x32xbf16>, vector<32x96xbf16>, vector<16x96xf32> -> vector<16x96xf32>
    %14 = arith.addf %13, %5 : vector<16x96xf32>
    %15 = vector.extract_strided_slice %14 {offsets = [0, 0], sizes = [16, 32], strides = [1, 1]} : vector<16x96xf32> to vector<16x32xf32>
    %16 = vector.extract_strided_slice %14 {offsets = [0, 32], sizes = [16, 32], strides = [1, 1]} : vector<16x96xf32> to vector<16x32xf32>
    %17 = vector.extract_strided_slice %14 {offsets = [0, 64], sizes = [16, 32], strides = [1, 1]} : vector<16x96xf32> to vector<16x32xf32>
    %cst_10 = arith.constant dense<0.000000e+00> : vector<16x16xf32>
    %18 = tpu.matmul %15, %16, %cst_10 {dimension_numbers = #tpu.dot_dimension_numbers<[1], [1], [0], [0], [0, 0, 1, 0], [], []>} : vector<16x32xf32>, vector<16x32xf32>, vector<16x16xf32> -> vector<16x16xf32>
    %19 = arith.addf %18, %2 : vector<16x16xf32>
    %cst_11 = arith.constant dense<0xFF800000> : vector<16xf32>
    %20 = vector.multi_reduction <maximumf>, %19, %cst_11 [1] : vector<16x16xf32> to vector<16xf32>
    %21 = vector.shape_cast %20 : vector<16xf32> to vector<16x1xf32>
    %22 = vector.broadcast %21 : vector<16x1xf32> to vector<16x16xf32>
    %23 = arith.subf %19, %22 : vector<16x16xf32>
    %24 = math.exp %23 : vector<16x16xf32>
    %cst_12 = arith.constant dense<0.000000e+00> : vector<16xf32>
    %25 = vector.multi_reduction <add>, %24, %cst_12 [1] : vector<16x16xf32> to vector<16xf32>
    %26 = vector.shape_cast %25 : vector<16xf32> to vector<16x1xf32>
    %27 = tpu.reciprocal %26 {approx = true} : vector<16x1xf32> -> vector<16x1xf32>
    %28 = vector.broadcast %27 : vector<16x1xf32> to vector<16x16xf32>
    %29 = arith.mulf %24, %28 : vector<16x16xf32>
    %cst_13 = arith.constant dense<0.000000e+00> : vector<16x32xf32>
    %30 = tpu.matmul %29, %17, %cst_13 {dimension_numbers = #tpu.dot_dimension_numbers<[1], [0], [0], [1], [0, 0, 1, 1], [], []>} : vector<16x16xf32>, vector<16x32xf32>, vector<16x32xf32> -> vector<16x32xf32>
    %31 = arith.truncf %30 : vector<16x32xf32> to vector<16x32xbf16>
    %cst_14 = arith.constant dense<0.000000e+00> : vector<16x32xf32>
    %32 = tpu.matmul %31, %1, %cst_14 {dimension_numbers = #tpu.dot_dimension_numbers<[1], [0], [0], [1], [0, 0, 1, 1], [], []>} : vector<16x32xbf16>, vector<32x32xbf16>, vector<16x32xf32> -> vector<16x32xf32>
    %33 = arith.addf %8, %32 : vector<16x32xf32>
    %34 = arith.truncf %33 : vector<16x32xf32> to vector<16x32xbf16>
    %35 = arith.index_cast %10 : i32 to index
    %c0_15 = arith.constant 0 : index
    %36 = vector.load %arg7[%35, %c0_15] : memref<16x32xbf16, #tpu.memory_space<vmem>>, vector<16x32xbf16>
    tpu.vector_store %arg7[%35, %c0_15], %34 {strides = array<i32>} : memref<16x32xbf16, #tpu.memory_space<vmem>>, vector<16x32xbf16>,
    %c1_i32 = arith.constant 1 : i32
    return
  }
  func.func @transform_0(%arg0: i32) -> (i32, i32) {
    %c0_i32 = arith.constant 0 : i32
    %c0_i32_0 = arith.constant 0 : i32
    return %arg0, %c0_i32 : i32, i32
  }
  func.func @transform_1(%arg0: i32) -> (i32, i32) {
    %c0_i32 = arith.constant 0 : i32
    %c0_i32_0 = arith.constant 0 : i32
    %c0_i32_1 = arith.constant 0 : i32
    return %c0_i32, %c0_i32_0 : i32, i32
  }
  func.func @transform_2(%arg0: i32) -> (i32, i32) {
    %c0_i32 = arith.constant 0 : i32
    %c0_i32_0 = arith.constant 0 : i32
    %c0_i32_1 = arith.constant 0 : i32
    return %c0_i32, %c0_i32_0 : i32, i32
  }
  func.func @transform_3(%arg0: i32) -> (i32, i32) {
    %c0_i32 = arith.constant 0 : i32
    %c0_i32_0 = arith.constant 0 : i32
    %c0_i32_1 = arith.constant 0 : i32
    return %c0_i32, %c0_i32_0 : i32, i32
  }
  func.func @transform_4(%arg0: i32) -> (i32, i32) {
    %c0_i32 = arith.constant 0 : i32
    %c0_i32_0 = arith.constant 0 : i32
    %c0_i32_1 = arith.constant 0 : i32
    return %c0_i32, %c0_i32_0 : i32, i32
  }
  func.func @transform_5(%arg0: i32) -> (i32, i32) {
    %c0_i32 = arith.constant 0 : i32
    %c0_i32_0 = arith.constant 0 : i32
    %c0_i32_1 = arith.constant 0 : i32
    return %c0_i32, %c0_i32_0 : i32, i32
  }
  func.func @transform_6(%arg0: i32) -> (i32, i32) {
    %c0_i32 = arith.constant 0 : i32
    %c0_i32_0 = arith.constant 0 : i32
    return %arg0, %c0_i32 : i32, i32
  }
}

</mosaic_0001>

<bundles_post_ra>
// kernel: tpu_custom_call.1
= control target key start
LH: loop header
LB: loop body
LE: loop exit
PB: predicated region body
PF: predicated region fallthrough
CT: control target
= control target key end

     0   :  { %11 = vsyncpa [#allocation3], 0  ;;  %s748_s0 = inlined_call_operand.hbm [shape: bf16[16,32], index: 0, kind: input, shape index: {}]   ;;  %s749_s1 = inlined_call_operand.hbm [shape: bf16[32,96], index: 1, kind: input, shape index: {}]   ;;  %s750_s2 = inlined_call_operand.vmem [shape: f32[1,96], index: 2, kind: input, shape index: {}]   ;;  %s751_s3 = inlined_call_operand.hbm [shape: bf16[32,32], index: 3, kind: input, shape index: {}]   ;;  %s752_s4 = inlined_call_operand.vmem [shape: f32[1,32], index: 4, kind: input, shape index: {}]   ;;  %s753_s5 = inlined_call_operand.hbm [shape: f32[16,16], index: 5, kind: input, shape index: {}]   ;;  %s754_s6 = inlined_call_operand.hbm [shape: bf16[16,32], index: 6, kind: output, shape index: {}]  }
   0x1   :  { %12 = vsyncpa [#allocation6], 0 }
   0x2   :  { %13 = vsyncpa [#allocation9], 0 }
   0x3   :  { %14 = vsyncpa [#allocation4], 0  ;;  %s652_s21 = smov [#allocation5]   ;;  %s653_s23 = smov [#allocation2]  }
   0x4   :  { %s32_s22 = sshll.u32 %s652_s21, 4  ;;  %s20_s24 = sshll.u32 %s653_s23, 4  ;;  %s33_s22 = int_to_ptr.vmem [resolvable:$true] %s32_s22  ;;  %s21_s24 = int_to_ptr.vmem [resolvable:$true] %s20_s24 }
   0x5   :  { %s552_s25 = scalar_lea.vmem %s33_s22, 256  ;;  %p557_p1 = scmp.lt.s32.totalorder %s33_s22, %s33_s22 }
   0x6   :  { %p553_p0 = scmp.ne.s32.totalorder %s33_s22, %s552_s25  ;;  %p558_p2 = scmp.lt.s32.totalorder %s552_s25, %s552_s25 }
   0x8   :  { %p559_p3 = por %p558_p2, %p557_p1 }
   0xa   :  { %p560_p4 = pnand %p559_p3, %p553_p0 }
   0xc   :  { %563 = shalt.err (!%p560_p4)
}
   0xd   :  { %s654_s26 = smov 64   ;;  %s655_s27 = smov 4  }
   0xe   :  { %38 = dma.hbm_to_vmem [thread:$0]  %s749_s1, 256, %s33_s22, [#allocation6], %s654_s26, %s654_s26, %s655_s27  }
   0xf   :  { %s572_s30 = scalar_lea.vmem %s21_s24, 128  ;;  %p577_p6 = scmp.lt.s32.totalorder %s21_s24, %s21_s24 }
  0x10   :  { %p573_p5 = scmp.ne.s32.totalorder %s21_s24, %s572_s30  ;;  %p578_p7 = scmp.lt.s32.totalorder %s572_s30, %s572_s30 }
  0x12   :  { %p579_p8 = por %p578_p7, %p577_p6 }
  0x14   :  { %p580_p9 = pnand %p579_p8, %p573_p5 }
  0x16   :  { %583 = shalt.err (!%p580_p9)
}
  0x17   :  { %26 = dma.hbm_to_vmem [thread:$0]  %s748_s0, 128, %s21_s24, [#allocation3], %s654_s26, %s654_s26, %s655_s27  }
  0x18   :  { %s656_s9 = smov [#allocation7]   ;;  %s657_s11 = smov [#allocation8]  }
  0x19   :  { %s46_s10 = sshll.u32 %s656_s9, 4  ;;  %s60_s12 = sshll.u32 %s657_s11, 4  ;;  %s47_s10 = int_to_ptr.vmem [resolvable:$true] %s46_s10  ;;  %s61_s12 = int_to_ptr.vmem [resolvable:$true] %s60_s12 }
  0x1a   :  { %s592_s1 = scalar_lea.vmem %s47_s10, 256  ;;  %p597_p11 = scmp.lt.s32.totalorder %s47_s10, %s47_s10 }
  0x1b   :  { %p593_p10 = scmp.ne.s32.totalorder %s47_s10, %s592_s1  ;;  %p598_p12 = scmp.lt.s32.totalorder %s592_s1, %s592_s1 }
  0x1d   :  { %p599_p13 = por %p598_p12, %p597_p11 }
  0x1f   :  { %p600_p0 = pnand %p599_p13, %p593_p10 }
  0x21   :  { %603 = shalt.err (!%p600_p0)
}
  0x22   :  { %52 = dma.hbm_to_vmem [thread:$0]  %s751_s3, 256, %s47_s10, [#allocation6], %s654_s26, %s654_s26, %s655_s27  }
  0x23   :  { %s612_s0 = scalar_lea.vmem %s61_s12, 256  ;;  %p617_p2 = scmp.lt.s32.totalorder %s61_s12, %s61_s12 }
  0x24   :  { %p613_p1 = scmp.ne.s32.totalorder %s61_s12, %s612_s0  ;;  %p618_p3 = scmp.lt.s32.totalorder %s612_s0, %s612_s0 }
  0x26   :  { %p619_p4 = por %p618_p3, %p617_p2 }
  0x28   :  { %p620_p5 = pnand %p619_p4, %p613_p1 }
  0x2a   :  { %623 = shalt.err (!%p620_p5)
}
  0x2b   :  { %s658_s15 = smov 128   ;;  %s659_s16 = smov 8  }
  0x2c   :  { %66 = dma.hbm_to_vmem [thread:$0]  %s753_s5, 256, %s61_s12, [#allocation9], %s658_s15, %s658_s15, %s659_s16  }
  0x2d   :  { %644 = dma.done.wait [#allocation3], 128  }
  0x2e   :  { %645 = vsyncadd [#allocation3], 4294967168 }
  0x2f   :  { %646 = dma.done.wait [#allocation6], 512  }
  0x30   :  { %647 = vsyncadd [#allocation6], 4294966784 }
  0x31   :  { %648 = dma.done.wait [#allocation9], 256  }
  0x32   :  { %649 = vsyncadd [#allocation9], 4294967040  ;;  %v660_v0 = vmov 0.0   ;;  %vm661_vm0 = vmmov 0   ;;  %v531_v1 = vld [vmem:[#allocation5 + $0x8] sm:$0xff]   ;;  %v532_v2 = vld [vmem:[#allocation5] sm:$0xff]  }
  0x33   :  { %489 = vmatprep.subr.bf16.mxu0 %v660_v0  ;;  %493 = vmatprep.mubr.msk.bf16.mxu0 %vm661_vm0, %v660_v0  ;;  %v533_v3 = vld [vmem:[#allocation2] sm:$0xff]   ;;  %vm123_vm1 = vcmask 261120   ;;  %s662_s19 = smov 96   ;;  %v88_v14 = vld [vmem:[#allocation8] sm:$0xff]  ;;  %v89_v15 = vld [vmem:[#allocation8 + $0x8] sm:$0xff]  ;;  %vm257_vm2 = vcmask 130048  }
  0x34   :  { %490 = vmatpush3.bf16.msra.mxu0 %v531_v1  ;;  %v456_v4 = vld [vmem:[%s750_s2] ss:$0 sm:$0xff]  ;;  %v535_v40 = vld [vmem:[#allocation7] sm:$0xff]   ;;  %vm434_vm3 = vcmask 257024   ;;  %s663_s21 = smov [#allocation10]  }
  0x35   :  { %491 = vmatprep.subr.bf16.mxu0 %v660_v0  ;;  %v534_v31 = vld [vmem:[#allocation7 + $0x8] sm:$0xff]   ;;  %s442_s22 = sshll.u32 %s663_s21, 4  ;;  %s443_s22 = int_to_ptr.vmem [resolvable:$true] %s442_s22 }
  0x36   :  { %v457_v44 = vld [vmem:[%s752_s4] ss:$0 sm:$0xff]  ;;  %s624_s23 = scalar_lea.vmem %s443_s22, 128  ;;  %p629_p7 = scmp.lt.s32.totalorder %s443_s22, %s443_s22 }
  0x37   :  { %p625_p6 = scmp.ne.s32.totalorder %s443_s22, %s624_s23  ;;  %p630_p8 = scmp.lt.s32.totalorder %s624_s23, %s624_s23 }
  0x38   :  { %492 = vmatpush3.bf16.msra.mxu0 %v532_v2 }
  0x39   :  { %511 = vmatprep.subr.bf16.mxu0 %v660_v0  ;;  %p631_p9 = por %p630_p8, %p629_p7 }
  0x3b   :  { %494 = vmatmul.mubr.msk.bf16.vlgmr.msra.gmra.mxu0 %vm123_vm1, %v533_v3  ;;  %p632_p10 = pnand %p631_p9, %p625_p6 }
  0x3c   :  { %515 = vmatprep.mubr.msk.bf16.mxu0 %vm661_vm0, %v660_v0  ;;  %512 = vmatpush3.bf16.msra.mxu0 %v534_v31 }
  0x3d   :  { %513 = vmatprep.subr.bf16.mxu0 %v660_v0 }
  0x40   :  { %514 = vmatpush3.bf16.msra.mxu0 %v535_v40 }
  0xfb   :  { %v161_v5 = vpop.f32.mrf.mxu0 }
  0xfc   :  { %v162_v6 = vadd.f32 %v456_v4, %v161_v5 }
  0xfd   :  { %v495_v7 = vpop.f32.mrf.mxu0 }
  0xfe   :  { %501 = vmatprep.mubr.msk.f32.mxu1 %vm123_vm1, %v162_v6 }
  0xff   :  { %v164_v8 = vpop.f32.mrf.mxu0 }
 0x100   :  { %v165_v9 = vadd.f32 %v456_v4, %v164_v8 }
 0x101   :  { %v496_v10 = vpop.f32.mrf.mxu0 }
 0x102   :  { %172 = vrot.lane.b32.xlu0 %v165_v9, %s662_s19 }
 0x106   :  { %170 = vrot.lane.b32.xlu0 %v162_v6, %s662_s19 }
 0x174   :  { %v173_v11 = vpop.permute.xlu0 %172 }
 0x175   :  { %497 = vmatprep.subr.msk.mxu1 %vm123_vm1, %v173_v11 }
 0x176   :  { %498 = vmatpush3.xpose.msk.msra.mxu1 %vm123_vm1, %v173_v11 }
 0x178   :  { %v171_v12 = vpop.permute.xlu0 %170 }
 0x179   :  { %499 = vmatprep.subr.msk.mxu1 %vm123_vm1, %v171_v12 }
 0x17a   :  { %500 = vmatpush3.xpose.msk.msra.mxu1 %vm123_vm1, %v171_v12 }
 0x17d   :  { %502 = vmatmul.mubr.msk.f32.vlgmr.msra.gmra.mxu1 %vm123_vm1, %v165_v9 }
 0x23d   :  { %v503_v13 = vpop.f32.mrf.mxu1 }
 0x23e   :  { %v254_v18 = vadd.f32 %v503_v13, %v89_v15 }
 0x23f   :  { %v248_v16 = vpop.f32.mrf.mxu1 }
 0x240   :  { %v249_v17 = vadd.f32 %v248_v16, %v88_v14  ;;  %v261_v20 = vsel %vm257_vm2, %v254_v18, -inf }
 0x242   :  { %v258_v19 = vsel %vm257_vm2, %v249_v17, -inf }
 0x243   :  { %259 = vmax.xlane.f32.xlu1 %v258_v19 }
 0x247   :  { %262 = vmax.xlane.f32.xlu1 %v261_v20 }
 0x2cc   :  { %v260_v21 = vpop.xlane.xlu1 %259 }
 0x2cd   :  { %v264_v22 = vsub.f32 %v249_v17, %v260_v21 }
 0x2cf   :  { %v266_v23 = vmul.f32 1.442695, %v264_v22 }
 0x2d0   :  { %v263_v24 = vpop.xlane.xlu1 %262 }
 0x2d1   :  { %536 = vpow2.f32 %v266_v23  ;;  %v265_v25 = vsub.f32 %v254_v18, %v263_v24 }
 0x2d3   :  { %v268_v26 = vmul.f32 1.442695, %v265_v25 }
 0x2d5   :  { %538 = vpow2.f32 %v268_v26 }
 0x2de   :  { %v537_v27 = vpop.eup %536 }
 0x2df   :  { %v270_v28 = vsel %vm257_vm2, %v537_v27, 0.0 }
 0x2e0   :  { %271 = vadd.xlane.f32.xlu0 %v270_v28 }
 0x2e2   :  { %v539_v29 = vpop.eup %538 }
 0x2e3   :  { %v273_v30 = vsel %vm257_vm2, %v539_v29, 0.0 }
 0x2e4   :  { %274 = vadd.xlane.f32.xlu1 %v273_v30 }
 0x2f5   :  { %282 = vrot.lane.b32.xlu1 %v165_v9, %s654_s26 }
 0x2f9   :  { %280 = vrot.lane.b32.xlu1 %v162_v6, %s654_s26 }
 0x369   :  { %v272_v32 = vpop.xlane.xlu0 %271 }
 0x36a   :  { %540 = vrcp.f32 %v272_v32 }
 0x36d   :  { %v275_v33 = vpop.xlane.xlu1 %274 }
 0x36e   :  { %542 = vrcp.f32 %v275_v33 }
 0x371   :  { %v283_v34 = vpop.permute.xlu1 %282 }
 0x372   :  { %504 = vmatprep.subr.mxu1 %v283_v34 }
 0x373   :  { %505 = vmatpush3.msra.mxu1 %v283_v34 }
 0x375   :  { %v281_v35 = vpop.permute.xlu1 %280 }
 0x376   :  { %506 = vmatprep.subr.mxu1 %v281_v35 }
 0x377   :  { %v541_v36 = vpop.eup %540  ;;  %507 = vmatpush3.msra.mxu1 %v281_v35 }
 0x378   :  { %v278_v37 = vmul.f32 %v541_v36, %v537_v27 }
 0x37a   :  { %508 = vmatprep.mubr.msk.f32.mxu1 %vm257_vm2, %v278_v37 }
 0x37b   :  { %v543_v38 = vpop.eup %542 }
 0x37c   :  { %v279_v39 = vmul.f32 %v543_v38, %v539_v29 }
 0x37e   :  { %509 = vmatmul.mubr.msk.f32.vlgmr.msra.gmra.mxu1 %vm257_vm2, %v279_v39 }
 0x43e   :  { %v510_v41 = vpop.f32.mrf.mxu1 }
 0x440   :  { %v358_v42 = vpop.f32.mrf.mxu1 }
 0x441   :  { %v367_v43 = vpack.c.bf16 %v510_v41, %v358_v42 }
 0x443   :  { %516 = vmatmul.mubr.msk.bf16.vlgmr.msra.gmra.mxu0 %vm123_vm1, %v367_v43 }
 0x503   :  { %v417_v45 = vpop.f32.mrf.mxu0 }
 0x504   :  { %v424_v46 = vadd.f32 %v457_v44, %v417_v45 }
 0x505   :  { %v517_v47 = vpop.f32.mrf.mxu0 }
 0x506   :  { %v473_v48 = vpack.c.bf16 %v424_v46, %v424_v46 }
 0x507   :  { %v420_v49 = vpop.f32.mrf.mxu0 }
 0x508   :  { %v425_v50 = vadd.f32 %v457_v44, %v420_v49  ;;  %435 = vst.msk [vmem:[#allocation10] sm:$0xf] %vm434_vm3, %v473_v48 }
 0x509   :  { %v518_v51 = vpop.f32.mrf.mxu0 }
 0x50a   :  { %v474_v52 = vpack.c.bf16 %v425_v50, %v425_v50 }
 0x50c   :  { %436 = vst.msk [vmem:[#allocation10 + $0x4] sm:$0xf] %vm434_vm3, %v474_v52 }
 0x50d   :  { %635 = shalt.err (!%p632_p10)
}
 0x50e   :  { %448 = dma.vmem_to_hbm [thread:$0]  %s443_s22, 128, %s754_s6, [#allocation4], %s654_s26, %s654_s26, %s655_s27  }
 0x50f   :  { %650 = dma.done.wait [#allocation4], 128  }
 0x510   :  { %651 = vsyncadd [#allocation4], 4294967168 }
 0x511   :  { %452 = vsyncpa [#allocation3], 1 }
 0x512   :  { %453 = vsyncpa [#allocation6], 1 }
 0x513   :  { %454 = vsyncpa [#allocation9], 1 }
 0x514   :  { %455 = vsyncpa [#allocation4], 1 }

</bundles_post_ra>
